<compile_context>
chip_gen: v7x
topology: tpu7x:2x2x1
jax: 0.10.0
libtpu: 0.0.40
codegen_flags: <defaults>
</compile_context>

<pallas_src>
import numpy as np
import jax
import jax.numpy as jnp
from jax.experimental import pallas as pl
from jax.experimental.pallas import tpu as pltpu

PACK = 4  # logical rows packed per physical row


def _round_up(x, m):
    return ((x + m - 1) // m) * m


def _mlp_kernel(x_ref, w1_ref, b1_ref, w2_ref, b2_ref, w3_ref, b3_ref, o_ref):
    # Fused 3-layer MLP on one packed row-tile.  MXU operands use the weights' dtype
    # (bf16 by default); accumulation stays f32 via preferred_element_type.
    cdt = w1_ref.dtype
    x = x_ref[...].astype(cdt)
    h1 = jnp.dot(x, w1_ref[...], preferred_element_type=jnp.float32) + b1_ref[...]
    h1 = jnp.maximum(h1, 0.0).astype(cdt)
    h2 = jnp.dot(h1, w2_ref[...], preferred_element_type=jnp.float32) + b2_ref[...]
    h2 = jnp.maximum(h2, 0.0).astype(cdt)
    out = jnp.dot(h2, w3_ref[...], preferred_element_type=jnp.float32) + b3_ref[...]
    o_ref[...] = out.astype(o_ref.dtype)


def _block_diag_np(w, p):
    w = np.asarray(w, dtype=np.float32)
    fi, fo = w.shape
    out = np.zeros((p * fi, p * fo), dtype=np.float32)
    for i in range(p):
        out[i * fi:(i + 1) * fi, i * fo:(i + 1) * fo] = w
    return out


def pack_params(params, pack=PACK, matmul_dtype=jnp.bfloat16):
    """Host-side (numpy), one-time packing: block-diagonal weights cast to the MXU
    operand dtype (bf16 by default; pass jnp.float32 to keep exact f32 matmuls) plus
    lane-tiled f32 biases.  Built with numpy so it is not retraced per call."""
    w1, b1, w2, b2, w3, b3 = params

    def wcast(w):
        return jnp.asarray(_block_diag_np(w, pack), dtype=matmul_dtype)

    def btile(b):
        return jnp.asarray(np.tile(np.asarray(b, dtype=np.float32), (1, pack)))

    return (wcast(w1), btile(b1), wcast(w2), btile(b2), wcast(w3), btile(b3))


def embed_social_features(ftr_list, packed_params, sub_batches=None, *,
                          pack=PACK, tile_n=4096, out_dtype=None,
                          core_parallel=False):
    """Applies the 3-layer MLP to the last axis of ftr_list (any leading dims).

    `packed_params` must come from pack_params(); `tile_n` is the number of *packed*
    rows per grid step.  `sub_batches` is accepted and ignored, exactly like the
    PyTorch module's forward.  Set out_dtype=jnp.bfloat16 when downstream tolerates
    it to halve the dominant store stream; set core_parallel=True on v7x to shard the
    row axis across both TensorCores.
    """
    del sub_batches  # unused by forward (matches the PyTorch module)
    w1p, b1p, w2p, b2p, w3p, b3p = packed_params
    in_dim_p = w1p.shape[0]            # pack * input_size
    out_dim_p = w3p.shape[1]           # pack * hidden_size
    in_dim = in_dim_p // pack
    hidden_size = out_dim_p // pack
    if out_dtype is None:
        out_dtype = ftr_list.dtype

    lead_shape = ftr_list.shape[:-1]
    x2d = ftr_list.reshape(-1, in_dim)
    n = x2d.shape[0]

    # Tiny (<=3 row) pad only when n is not a multiple of the pack factor.  This is a
    # full extra copy of x; callers should feed N % 4 == 0 to avoid it entirely.
    n_round = _round_up(n, pack)
    if n_round != n:
        x2d = jnp.pad(x2d, ((0, n_round - n), (0, 0)))
    xp = x2d.reshape(n_round // pack, in_dim_p)   # bit-identical layout: free reshape
    np_rows = xp.shape[0]

    # --- tile sizing -----------------------------------------------------------
    tile_n = _round_up(max(tile_n, 8), 8)
    tile_n = min(tile_n, _round_up(np_rows, 8))          # never bigger than the input
    # Keep >= 4 grid steps (pipelining; lets v7x's 2 TensorCores each see >= 2 steps),
    # but never shrink tiles below 1024 packed rows or per-step overhead dominates.
    four_step = _round_up(pl.cdiv(np_rows, 4), 8)
    if four_step >= 1024:
        tile_n = min(tile_n, four_step)

    grid = (pl.cdiv(np_rows, tile_n),)
    # "parallel" is portable across v5e/v6e/v7x; CORE_PARALLEL shards the row axis
    # across v7x's two TensorCores (only that changes codegen on multi-TC chips).
    row_sem = pltpu.CORE_PARALLEL if core_parallel else "parallel"

    # Weights/biases use constant index_maps -> the pipeline keeps them resident in
    # VMEM and does not re-issue their DMAs between grid steps.
    outp = pl.pallas_call(
        _mlp_kernel,
        out_shape=jax.ShapeDtypeStruct((np_rows, out_dim_p), out_dtype),
        grid_spec=pltpu.PrefetchScalarGridSpec(
            num_scalar_prefetch=0,
            grid=grid,
            in_specs=[
                pl.BlockSpec((tile_n, in_dim_p), lambda i: (i, 0)),   # packed x tile
                pl.BlockSpec(w1p.shape, lambda i: (0, 0)),            # W1' (resident)
                pl.BlockSpec(b1p.shape, lambda i: (0, 0)),            # b1'
                pl.BlockSpec(w2p.shape, lambda i: (0, 0)),            # W2'
                pl.BlockSpec(b2p.shape, lambda i: (0, 0)),            # b2'
                pl.BlockSpec(w3p.shape, lambda i: (0, 0)),            # W3'
                pl.BlockSpec(b3p.shape, lambda i: (0, 0)),            # b3'
            ],
            out_specs=pl.BlockSpec((tile_n, out_dim_p), lambda i: (i, 0)),
        ),
        compiler_params=pltpu.CompilerParams(dimension_semantics=(row_sem,)),
    )(xp, w1p, b1p, w2p, b2p, w3p, b3p)

    # (np_rows, pack*H) is bit-identical in HBM to (n_round, H): free reshape.
    out = outp.reshape(n_round, hidden_size)
    if n_round != n:          # slice only materializes when the pad path fired
        out = out[:n]
    return out.reshape(*lead_shape, hidden_size)


def init_params(key, input_size, hidden_size, dtype=jnp.float32):
    """Deterministic synthetic init. Weights stored as (in, out)."""
    k1, k2, k3, k4, k5, k6 = jax.random.split(key, 6)

    def lin(kw, kb, fan_in, fan_out):
        bound = 1.0 / jnp.sqrt(jnp.float32(fan_in))
        w = jax.random.uniform(kw, (fan_in, fan_out), dtype, -bound, bound)
        b = jax.random.uniform(kb, (1, fan_out), dtype, -bound, bound)
        return w, b

    w1, b1 = lin(k1, k2, input_size, 32)
    w2, b2 = lin(k3, k4, 32, 64)
    w3, b3 = lin(k5, k6, 64, hidden_size)
    return (w1, b1, w2, b2, w3, b3)


def _reference(ftr_list, params, compute_dtype=jnp.float32):
    """Pure-JAX reference.  compute_dtype emulates the kernel's MXU operand dtype
    (operands rounded to compute_dtype, products/accumulation in f32)."""
    w1, b1, w2, b2, w3, b3 = params

    def mm(a, w):
        return jnp.dot(a.astype(compute_dtype).astype(jnp.float32),
                       jnp.asarray(w).astype(compute_dtype).astype(jnp.float32))

    h = jnp.maximum(mm(ftr_list, w1) + b1, 0.0)
    h = jnp.maximum(mm(h, w2) + b2, 0.0)
    return mm(h, w3) + b3


if __name__ == "__main__":
    key = jax.random.PRNGKey(0)
    k_x, k_x2, k_x3, k_p = jax.random.split(key, 4)

    input_size = 8        # social-feature dim per agent pair
    hidden_size = 32
    batch, agents = 2, 16  # ftr_list: (batch, agents, input_size)

    params = init_params(k_p, input_size, hidden_size)
    packed_params = pack_params(params)          # bf16 MXU operands, f32 accumulation
    sub_batches = None                           # unused by forward (matches PyTorch)

    # Reference emulating bf16 matmul operands with f32 accumulation (per review:
    # bf16 operands break the old 1e-5 check vs pure f32, so compare like-for-like).
    ref_fn = lambda x: _reference(x, params, compute_dtype=jnp.bfloat16)

    # 1) Small, module-shaped input.
    ftr_list = jax.random.normal(k_x, (batch, agents, input_size), jnp.float32)
    out = jax.block_until_ready(
        embed_social_features(ftr_list, packed_params, sub_batches))
    assert out.shape == (batch, agents, hidden_size)
    assert jnp.allclose(out, ref_fn(ftr_list), atol=1e-4, rtol=1e-4)

    # 2) Larger flat batch exercising resident weights and bigger row tiles.
    ftr_big = jax.random.normal(k_x2, (8192, input_size), jnp.float32)
    out_big = jax.block_until_ready(embed_social_features(ftr_big, packed_params))
    assert out_big.shape == (8192, hidden_size)
    assert jnp.allclose(out_big, ref_fn(ftr_big), atol=1e-4, rtol=1e-4)

    # 3) Ragged N (not a multiple of PACK or the tile): exercises the masked edge
    #    block and the (discouraged, conditional) pad/slice tail path.
    ftr_rag = jax.random.normal(k_x3, (1003, input_size), jnp.float32)
    out_rag = jax.block_until_ready(embed_social_features(ftr_rag, packed_params))
    assert out_rag.shape == (1003, hidden_size)
    assert jnp.allclose(out_rag, ref_fn(ftr_rag), atol=1e-4, rtol=1e-4)

    print("KERNEL_OK")
</pallas_src>

<mosaic_0001>
module attributes {stable_mosaic.version = 11 : i64} {
  func.func @_mlp_kernel(%arg0: i32, %arg1: memref<8x32xf32, #tpu.memory_space<vmem>>, %arg2: memref<32x128xbf16, #tpu.memory_space<vmem>>, %arg3: memref<1x128xf32, #tpu.memory_space<vmem>>, %arg4: memref<128x256xbf16, #tpu.memory_space<vmem>>, %arg5: memref<1x256xf32, #tpu.memory_space<vmem>>, %arg6: memref<256x128xbf16, #tpu.memory_space<vmem>>, %arg7: memref<1x128xf32, #tpu.memory_space<vmem>>, %arg8: memref<8x128xf32, #tpu.memory_space<vmem>>) attributes {dimension_semantics = [#tpu.dimension_semantics<parallel>], iteration_bounds = array<i64: 1>, scalar_prefetch = 0 : i64, scratch_operands = 0 : i64, tpu.core_type = #tpu.core_type<tc>, window_params = [{transform_indices = @transform_0, window_bounds = array<i64: 8, 32>}, {pipeline_mode = #tpu.pipeline_mode<synchronous>, transform_indices = @transform_1, window_bounds = array<i64: 32, 128>}, {pipeline_mode = #tpu.pipeline_mode<synchronous>, transform_indices = @transform_2, window_bounds = array<i64: 1, 128>}, {pipeline_mode = #tpu.pipeline_mode<synchronous>, transform_indices = @transform_3, window_bounds = array<i64: 128, 256>}, {pipeline_mode = #tpu.pipeline_mode<synchronous>, transform_indices = @transform_4, window_bounds = array<i64: 1, 256>}, {pipeline_mode = #tpu.pipeline_mode<synchronous>, transform_indices = @transform_5, window_bounds = array<i64: 256, 128>}, {pipeline_mode = #tpu.pipeline_mode<synchronous>, transform_indices = @transform_6, window_bounds = array<i64: 1, 128>}, {transform_indices = @transform_7, window_bounds = array<i64: 8, 128>}]} {
    %c0 = arith.constant 0 : index
    %c0_0 = arith.constant 0 : index
    %0 = vector.load %arg1[%c0, %c0_0] : memref<8x32xf32, #tpu.memory_space<vmem>>, vector<8x32xf32>
    %1 = arith.truncf %0 : vector<8x32xf32> to vector<8x32xbf16>
    %c0_1 = arith.constant 0 : index
    %c0_2 = arith.constant 0 : index
    %2 = vector.load %arg2[%c0_1, %c0_2] : memref<32x128xbf16, #tpu.memory_space<vmem>>, vector<32x128xbf16>
    %cst = arith.constant dense<0.000000e+00> : vector<8x128xf32>
    %3 = tpu.matmul %1, %2, %cst {dimension_numbers = #tpu.dot_dimension_numbers<[1], [0], [0], [1], [0, 0, 1, 1], [], []>} : vector<8x32xbf16>, vector<32x128xbf16>, vector<8x128xf32> -> vector<8x128xf32>
    %c0_3 = arith.constant 0 : index
    %c0_4 = arith.constant 0 : index
    %4 = vector.load %arg3[%c0_3, %c0_4] : memref<1x128xf32, #tpu.memory_space<vmem>>, vector<1x128xf32>
    %5 = vector.broadcast %4 : vector<1x128xf32> to vector<8x128xf32>
    %6 = arith.addf %3, %5 : vector<8x128xf32>
    %cst_5 = arith.constant 0.000000e+00 : f32
    %7 = vector.broadcast %cst_5 : f32 to vector<8x128xf32>
    %8 = arith.maximumf %6, %7 : vector<8x128xf32>
    %9 = arith.truncf %8 : vector<8x128xf32> to vector<8x128xbf16>
    %c0_6 = arith.constant 0 : index
    %c0_7 = arith.constant 0 : index
    %10 = vector.load %arg4[%c0_6, %c0_7] : memref<128x256xbf16, #tpu.memory_space<vmem>>, vector<128x256xbf16>
    %cst_8 = arith.constant dense<0.000000e+00> : vector<8x256xf32>
    %11 = tpu.matmul %9, %10, %cst_8 {dimension_numbers = #tpu.dot_dimension_numbers<[1], [0], [0], [1], [0, 0, 1, 1], [], []>} : vector<8x128xbf16>, vector<128x256xbf16>, vector<8x256xf32> -> vector<8x256xf32>
    %c0_9 = arith.constant 0 : index
    %c0_10 = arith.constant 0 : index
    %12 = vector.load %arg5[%c0_9, %c0_10] : memref<1x256xf32, #tpu.memory_space<vmem>>, vector<1x256xf32>
    %13 = vector.broadcast %12 : vector<1x256xf32> to vector<8x256xf32>
    %14 = arith.addf %11, %13 : vector<8x256xf32>
    %cst_11 = arith.constant 0.000000e+00 : f32
    %15 = vector.broadcast %cst_11 : f32 to vector<8x256xf32>
    %16 = arith.maximumf %14, %15 : vector<8x256xf32>
    %17 = arith.truncf %16 : vector<8x256xf32> to vector<8x256xbf16>
    %c0_12 = arith.constant 0 : index
    %c0_13 = arith.constant 0 : index
    %18 = vector.load %arg6[%c0_12, %c0_13] : memref<256x128xbf16, #tpu.memory_space<vmem>>, vector<256x128xbf16>
    %cst_14 = arith.constant dense<0.000000e+00> : vector<8x128xf32>
    %19 = tpu.matmul %17, %18, %cst_14 {dimension_numbers = #tpu.dot_dimension_numbers<[1], [0], [0], [1], [0, 0, 1, 1], [], []>} : vector<8x256xbf16>, vector<256x128xbf16>, vector<8x128xf32> -> vector<8x128xf32>
    %c0_15 = arith.constant 0 : index
    %c0_16 = arith.constant 0 : index
    %20 = vector.load %arg7[%c0_15, %c0_16] : memref<1x128xf32, #tpu.memory_space<vmem>>, vector<1x128xf32>
    %21 = vector.broadcast %20 : vector<1x128xf32> to vector<8x128xf32>
    %22 = arith.addf %19, %21 : vector<8x128xf32>
    %c0_17 = arith.constant 0 : index
    %c0_18 = arith.constant 0 : index
    %23 = vector.load %arg8[%c0_17, %c0_18] : memref<8x128xf32, #tpu.memory_space<vmem>>, vector<8x128xf32>
    tpu.vector_store %arg8[%c0_17, %c0_18], %22 {strides = array<i32>} : memref<8x128xf32, #tpu.memory_space<vmem>>, vector<8x128xf32>,
    return
  }
  func.func @transform_0(%arg0: i32) -> (i32, i32) {
    %c0_i32 = arith.constant 0 : i32
    %c0_i32_0 = arith.constant 0 : i32
    return %arg0, %c0_i32 : i32, i32
  }
  func.func @transform_1(%arg0: i32) -> (i32, i32) {
    %c0_i32 = arith.constant 0 : i32
    %c0_i32_0 = arith.constant 0 : i32
    %c0_i32_1 = arith.constant 0 : i32
    return %c0_i32, %c0_i32_0 : i32, i32
  }
  func.func @transform_2(%arg0: i32) -> (i32, i32) {
    %c0_i32 = arith.constant 0 : i32
    %c0_i32_0 = arith.constant 0 : i32
    %c0_i32_1 = arith.constant 0 : i32
    return %c0_i32, %c0_i32_0 : i32, i32
  }
  func.func @transform_3(%arg0: i32) -> (i32, i32) {
    %c0_i32 = arith.constant 0 : i32
    %c0_i32_0 = arith.constant 0 : i32
    %c0_i32_1 = arith.constant 0 : i32
    return %c0_i32, %c0_i32_0 : i32, i32
  }
  func.func @transform_4(%arg0: i32) -> (i32, i32) {
    %c0_i32 = arith.constant 0 : i32
    %c0_i32_0 = arith.constant 0 : i32
    %c0_i32_1 = arith.constant 0 : i32
    return %c0_i32, %c0_i32_0 : i32, i32
  }
  func.func @transform_5(%arg0: i32) -> (i32, i32) {
    %c0_i32 = arith.constant 0 : i32
    %c0_i32_0 = arith.constant 0 : i32
    %c0_i32_1 = arith.constant 0 : i32
    return %c0_i32, %c0_i32_0 : i32, i32
  }
  func.func @transform_6(%arg0: i32) -> (i32, i32) {
    %c0_i32 = arith.constant 0 : i32
    %c0_i32_0 = arith.constant 0 : i32
    %c0_i32_1 = arith.constant 0 : i32
    return %c0_i32, %c0_i32_0 : i32, i32
  }
  func.func @transform_7(%arg0: i32) -> (i32, i32) {
    %c0_i32 = arith.constant 0 : i32
    %c0_i32_0 = arith.constant 0 : i32
    return %arg0, %c0_i32 : i32, i32
  }
}

</mosaic_0001>

<bundles_post_ra>
// kernel: tpu_custom_call.1
= control target key start
LH: loop header
LB: loop body
LE: loop exit
PB: predicated region body
PF: predicated region fallthrough
CT: control target
= control target key end

     0   :  { %12 = vsyncpa [#allocation3], 0  ;;  %s867_s0 = inlined_call_operand.hbm [shape: f32[8,32], index: 0, kind: input, shape index: {}]   ;;  %s868_s1 = inlined_call_operand.hbm [shape: bf16[32,128], index: 1, kind: input, shape index: {}]   ;;  %s869_s2 = inlined_call_operand.vmem [shape: f32[1,128], index: 2, kind: input, shape index: {}]   ;;  %s870_s3 = inlined_call_operand.hbm [shape: bf16[128,256], index: 3, kind: input, shape index: {}]   ;;  %s871_s4 = inlined_call_operand.vmem [shape: f32[1,256], index: 4, kind: input, shape index: {}]   ;;  %s872_s5 = inlined_call_operand.hbm [shape: bf16[256,128], index: 5, kind: input, shape index: {}]   ;;  %s873_s6 = inlined_call_operand.vmem [shape: f32[1,128], index: 6, kind: input, shape index: {}]   ;;  %s874_s7 = inlined_call_operand.hbm [shape: f32[8,128], index: 7, kind: output, shape index: {}]  }
   0x1   :  { %13 = vsyncpa [#allocation6], 0 }
   0x2   :  { %14 = vsyncpa [#allocation9], 0 }
   0x3   :  { %15 = vsyncpa [#allocation4], 0  ;;  %s740_s24 = smov [#allocation5]   ;;  %s622_s28 = scalar_lea.hbm %s868_s1, 256 }
   0x4   :  { %s31_s25 = sshll.u32 %s740_s24, 4  ;;  %p623_p0 = scmp.ne.s32.totalorder %s868_s1, %s622_s28  ;;  %s32_s25 = int_to_ptr.vmem [resolvable:$true] %s31_s25 }
   0x5   :  { %p626_p1 = scmp.lt.u32.totalorder %s622_s28, %s868_s1 }
   0x7   :  { %p628_p2 = pnand %p626_p1, %p623_p0 }
   0x9   :  { %631 = shalt.err (!%p628_p2)
}
   0xa   :  { %s632_s10 = scalar_lea.vmem %s32_s25, 256  ;;  %p637_p4 = scmp.lt.s32.totalorder %s32_s25, %s32_s25 }
   0xb   :  { %p633_p3 = scmp.ne.s32.totalorder %s32_s25, %s632_s10  ;;  %p638_p5 = scmp.lt.s32.totalorder %s632_s10, %s632_s10 }
   0xd   :  { %p639_p6 = por %p638_p5, %p637_p4 }
   0xf   :  { %p640_p7 = pnand %p639_p6, %p633_p3 }
  0x11   :  { %643 = shalt.err (!%p640_p7)
}
  0x12   :  { %s741_s11 = smov 64   ;;  %s742_s12 = smov 4  }
  0x13   :  { %37 = dma.hbm_to_vmem [thread:$0]  %s868_s1, 256, %s32_s25, [#allocation6], %s741_s11, %s741_s11, %s742_s12  }
  0x14   :  { %s743_s15 = smov [#allocation2]   ;;  %s744_s17 = smov [#allocation7]  }
  0x15   :  { %s22_s16 = sshll.u32 %s743_s15, 4  ;;  %s45_s18 = sshll.u32 %s744_s17, 4  ;;  %s23_s16 = int_to_ptr.vmem [resolvable:$true] %s22_s16  ;;  %s46_s18 = int_to_ptr.vmem [resolvable:$true] %s45_s18 }
  0x16   :  { %s644_s21 = scalar_lea.hbm %s867_s0, 128 }
  0x17   :  { %p645_p8 = scmp.ne.s32.totalorder %s867_s0, %s644_s21  ;;  %p648_p9 = scmp.lt.u32.totalorder %s644_s21, %s867_s0 }
  0x19   :  { %p650_p10 = pnand %p648_p9, %p645_p8 }
  0x1b   :  { %653 = shalt.err (!%p650_p10)
}
  0x1c   :  { %s654_s1 = scalar_lea.vmem %s23_s16, 128  ;;  %p659_p12 = scmp.lt.s32.totalorder %s23_s16, %s23_s16 }
  0x1d   :  { %p655_p11 = scmp.ne.s32.totalorder %s23_s16, %s654_s1  ;;  %p660_p13 = scmp.lt.s32.totalorder %s654_s1, %s654_s1 }
  0x1f   :  { %p661_p0 = por %p660_p13, %p659_p12 }
  0x21   :  { %p662_p1 = pnand %p661_p0, %p655_p11 }
  0x23   :  { %665 = shalt.err (!%p662_p1)
}
  0x24   :  { %25 = dma.hbm_to_vmem [thread:$0]  %s867_s0, 128, %s23_s16, [#allocation3]  }
  0x25   :  { %s666_s30 = scalar_lea.hbm %s870_s3, 2048 }
  0x26   :  { %p667_p2 = scmp.ne.s32.totalorder %s870_s3, %s666_s30  ;;  %p670_p3 = scmp.lt.u32.totalorder %s666_s30, %s870_s3 }
  0x28   :  { %p672_p4 = pnand %p670_p3, %p667_p2 }
  0x2a   :  { %675 = shalt.err (!%p672_p4)
}
  0x2b   :  { %s676_s14 = scalar_lea.vmem %s46_s18, 2048  ;;  %p681_p6 = scmp.lt.s32.totalorder %s46_s18, %s46_s18 }
  0x2c   :  { %p677_p5 = scmp.ne.s32.totalorder %s46_s18, %s676_s14  ;;  %p682_p7 = scmp.lt.s32.totalorder %s676_s14, %s676_s14 }
  0x2e   :  { %p683_p8 = por %p682_p7, %p681_p6 }
  0x30   :  { %p684_p9 = pnand %p683_p8, %p677_p5 }
  0x32   :  { %687 = shalt.err (!%p684_p9)
}
  0x33   :  { %s745_s0 = smov 128   ;;  %s746_s15 = smov 8  }
  0x34   :  { %51 = dma.hbm_to_vmem [thread:$0]  %s870_s3, 2048, %s46_s18, [#allocation6], %s745_s0, %s745_s0, %s746_s15  }
  0x35   :  { %s747_s19 = smov [#allocation8]   ;;  %s688_s23 = scalar_lea.hbm %s872_s5, 2048 }
  0x36   :  { %s59_s20 = sshll.u32 %s747_s19, 4  ;;  %p689_p10 = scmp.ne.s32.totalorder %s872_s5, %s688_s23  ;;  %s60_s20 = int_to_ptr.vmem [resolvable:$true] %s59_s20 }
  0x37   :  { %p692_p11 = scmp.lt.u32.totalorder %s688_s23, %s872_s5 }
  0x39   :  { %p694_p12 = pnand %p692_p11, %p689_p10 }
  0x3b   :  { %697 = shalt.err (!%p694_p12)
}
  0x3c   :  { %s698_s27 = scalar_lea.vmem %s60_s20, 2048  ;;  %p703_p0 = scmp.lt.s32.totalorder %s60_s20, %s60_s20 }
  0x3d   :  { %p699_p13 = scmp.ne.s32.totalorder %s60_s20, %s698_s27  ;;  %p704_p1 = scmp.lt.s32.totalorder %s698_s27, %s698_s27 }
  0x3f   :  { %p705_p2 = por %p704_p1, %p703_p0 }
  0x41   :  { %p706_p3 = pnand %p705_p2, %p699_p13 }
  0x43   :  { %709 = shalt.err (!%p706_p3)
}
  0x44   :  { %65 = dma.hbm_to_vmem [thread:$0]  %s872_s5, 2048, %s60_s20, [#allocation9], %s741_s11, %s741_s11, %s742_s12  }
  0x45   :  { %732 = dma.done.wait [#allocation3], 128  }
  0x46   :  { %733 = vsyncadd [#allocation3], 4294967168 }
  0x47   :  { %734 = dma.done.wait [#allocation6], 2304  }
  0x48   :  { %735 = vsyncadd [#allocation6], 4294964992 }
  0x49   :  { %736 = dma.done.wait [#allocation9], 2048  }
  0x4a   :  { %737 = vsyncadd [#allocation9], 4294965248  ;;  %v748_v0 = vmov 0.0   ;;  %vm749_vm0 = vmmov 0   ;;  %v580_v1 = vld [vmem:[#allocation5] sm:$0xff]   ;;  %v581_v2 = vld [vmem:[#allocation5 + $0x8] sm:$0xff]   ;;  %v170_v46 = vlaneseq }
  0x4b   :  { %560 = vmatprep.subr.bf16.mxu0 %v748_v0  ;;  %564 = vmatprep.mubr.msk.bf16.mxu0 %vm749_vm0, %v748_v0  ;;  %v81_v3 = vld [vmem:[#allocation2] sm:$0xff]  ;;  %v585_v6 = vld [vmem:[#allocation7 + $0x14] ss:$8 sps:$4 sm:$0xff]   ;;  %vm106_vm1 = vcmask 261120   ;;  %v587_v8 = vld [vmem:[#allocation7 + $0x10] ss:$8 sps:$4 sm:$0xff]  }
  0x4c   :  { %561 = vmatpush3.bf16.msra.mxu0 %v580_v1  ;;  %v582_v4 = vld [vmem:[#allocation7 + $0x4] ss:$8 sps:$4 sm:$0xff]   ;;  %v584_v5 = vld [vmem:[#allocation7] ss:$8 sps:$4 sm:$0xff]   ;;  %v82_v7 = vpack.c.bf16 %v81_v3, %v81_v3  ;;  %v591_v11 = vld [vmem:[#allocation7 + $0x34] ss:$8 sps:$4 sm:$0xff]  }
  0x4d   :  { %562 = vmatprep.subr.bf16.mxu0 %v748_v0  ;;  %260 = vmatprep.subr.bf16.mxu1 %v582_v4  ;;  %v588_v9 = vld [vmem:[#allocation7 + $0x24] ss:$8 sps:$4 sm:$0xff]   ;;  %v590_v10 = vld [vmem:[#allocation7 + $0x20] ss:$8 sps:$4 sm:$0xff]   ;;  %v593_v12 = vld [vmem:[#allocation7 + $0x30] ss:$8 sps:$4 sm:$0xff]  }
  0x4e   :  { %261 = vmatpush1.bf16.msra.mxu1 %v584_v5  ;;  %v594_v13 = vld [vmem:[#allocation7 + $0x44] ss:$8 sps:$4 sm:$0xff]   ;;  %v596_v14 = vld [vmem:[#allocation7 + $0x40] ss:$8 sps:$4 sm:$0xff]   ;;  %v597_v15 = vld [vmem:[#allocation7 + $0x54] ss:$8 sps:$4 sm:$0xff]  }
  0x4f   :  { %262 = vmatprep.subr.bf16.mxu1 %v585_v6  ;;  %v599_v16 = vld [vmem:[#allocation7 + $0x50] ss:$8 sps:$4 sm:$0xff]   ;;  %v600_v17 = vld [vmem:[#allocation7 + $0x64] ss:$8 sps:$4 sm:$0xff]   ;;  %v602_v18 = vld [vmem:[#allocation7 + $0x60] ss:$8 sps:$4 sm:$0xff]  }
  0x50   :  { %563 = vmatpush3.bf16.msra.mxu0 %v581_v2  ;;  %v603_v19 = vld [vmem:[#allocation7 + $0x74] ss:$8 sps:$4 sm:$0xff]   ;;  %v605_v20 = vld [vmem:[#allocation7 + $0x70] ss:$8 sps:$4 sm:$0xff]   ;;  %v750_v21 = vmov 0   ;;  %v606_v22 = vld [vmem:[#allocation8 + $0x40] sm:$0xff]  }
  0x51   :  { %292 = vmatprep.mubr.bf16.mxu1 %v750_v21  ;;  %v607_v23 = vld [vmem:[#allocation8] sm:$0xff]   ;;  %v608_v24 = vld [vmem:[#allocation8 + $0x48] sm:$0xff]   ;;  %538 = vmatprep.subr.bf16.mxu0 %v606_v22  ;;  %v610_v26 = vld [vmem:[#allocation8 + $0x50] sm:$0xff]   ;;  %v171_v47 = vshrl.u32 %v170_v46, 7 }
  0x52   :  { %263 = vmatpush1.bf16.msra.mxu1 %v587_v8  ;;  %v609_v25 = vld [vmem:[#allocation8 + $0x8] sm:$0xff]   ;;  %v611_v27 = vld [vmem:[#allocation8 + $0x10] sm:$0xff]   ;;  %v612_v28 = vld [vmem:[#allocation8 + $0x58] sm:$0xff]  }
  0x53   :  { %565 = vmatmul.mubr.msk.bf16.vlgmr.msra.gmra.mrb[0].mxu0 %vm106_vm1, %v82_v7  ;;  %264 = vmatprep.subr.bf16.mxu1 %v588_v9  ;;  %v613_v29 = vld [vmem:[#allocation8 + $0x18] sm:$0xff]   ;;  %v614_v30 = vld [vmem:[#allocation8 + $0x60] sm:$0xff]   ;;  %v616_v32 = vld [vmem:[#allocation8 + $0x68] sm:$0xff]   ;;  %v172_v48 = vsub.s32 0, %v171_v47  ;;  %v176_v50 = vsub.s32 1, %v171_v47 }
  0x54   :  { %539 = vmatpush3.bf16.msra.mxu0 %v607_v23  ;;  %v615_v31 = vld [vmem:[#allocation8 + $0x20] sm:$0xff]   ;;  %v617_v33 = vld [vmem:[#allocation8 + $0x28] sm:$0xff]   ;;  %v618_v42 = vld [vmem:[#allocation8 + $0x70] sm:$0xff]  }
  0x55   :  { %540 = vmatprep.subr.bf16.mxu0 %v608_v24  ;;  %v498_v34 = vld [vmem:[%s869_s2] ss:$0 sm:$0xff]  ;;  %v619_v43 = vld [vmem:[#allocation8 + $0x30] sm:$0xff]   ;;  %v620_v44 = vld [vmem:[#allocation8 + $0x78] sm:$0xff]  }
  0x56   :  { %265 = vmatpush1.bf16.msra.mxu1 %v590_v10  ;;  %v621_v45 = vld [vmem:[#allocation8 + $0x38] sm:$0xff]   ;;  %v168_v49 = vld [vmem:[%s871_s4] sm:$0x3]  ;;  %s751_s4 = smov [#allocation10]  }
  0x57   :  { %266 = vmatprep.subr.bf16.mxu1 %v591_v11  ;;  %v173_v51 = vrot.slane %v168_v49, %v172_v48  ;;  %v177_v52 = vrot.slane %v168_v49, %v176_v50  ;;  %v518_v0 = vld [vmem:[%s873_s6] ss:$0 sm:$0xff]  ;;  %s487_s30 = sshll.u32 %s751_s4, 4  ;;  %s488_s30 = int_to_ptr.vmem [resolvable:$true] %s487_s30 }
  0x58   :  { %541 = vmatpush3.bf16.msra.mxu0 %v609_v25  ;;  %s710_s8 = scalar_lea.vmem %s488_s30, 128  ;;  %p715_p5 = scmp.lt.s32.totalorder %s488_s30, %s488_s30 }
  0x59   :  { %542 = vmatprep.subr.bf16.mxu0 %v610_v26  ;;  %p711_p4 = scmp.ne.s32.totalorder %s488_s30, %s710_s8  ;;  %p716_p6 = scmp.lt.s32.totalorder %s710_s8, %s710_s8 }
  0x5a   :  { %267 = vmatpush1.bf16.msra.mxu1 %v593_v12 }
  0x5b   :  { %268 = vmatprep.subr.bf16.mxu1 %v594_v13  ;;  %p717_p7 = por %p716_p6, %p715_p5 }
  0x5c   :  { %543 = vmatpush3.bf16.msra.mxu0 %v611_v27 }
  0x5d   :  { %544 = vmatprep.subr.bf16.mxu0 %v612_v28  ;;  %p718_p8 = pnand %p717_p7, %p711_p4 }
  0x5e   :  { %269 = vmatpush1.bf16.msra.mxu1 %v596_v14 }
  0x5f   :  { %270 = vmatprep.subr.bf16.mxu1 %v597_v15 }
  0x60   :  { %545 = vmatpush3.bf16.msra.mxu0 %v613_v29 }
  0x61   :  { %546 = vmatprep.subr.bf16.mxu0 %v614_v30 }
  0x62   :  { %271 = vmatpush1.bf16.msra.mxu1 %v599_v16 }
  0x63   :  { %272 = vmatprep.subr.bf16.mxu1 %v600_v17 }
  0x64   :  { %547 = vmatpush3.bf16.msra.mxu0 %v615_v31 }
  0x65   :  { %548 = vmatprep.subr.bf16.mxu0 %v616_v32 }
  0x66   :  { %273 = vmatpush1.bf16.msra.mxu1 %v602_v18 }
  0x67   :  { %274 = vmatprep.subr.bf16.mxu1 %v603_v19 }
  0x68   :  { %549 = vmatpush3.bf16.msra.mxu0 %v617_v33 }
  0x69   :  { %550 = vmatprep.subr.bf16.mxu0 %v618_v42 }
  0x6a   :  { %275 = vmatpush1.bf16.msra.mxu1 %v605_v20 }
  0x6c   :  { %551 = vmatpush3.bf16.msra.mxu0 %v619_v43 }
  0x6d   :  { %552 = vmatprep.subr.bf16.mxu0 %v620_v44 }
  0x70   :  { %553 = vmatpush3.bf16.msra.mxu0 %v621_v45 }
 0x126   :  { %v144_v35 = vpop.f32.mrb[0].mxu0 }
 0x127   :  { %v145_v36 = vadd.f32 %v498_v34, %v144_v35  ;;  %v566_v37 = vpop.f32.mrb[1].mxu0 }
 0x128   :  { %v147_v38 = vpop.f32.mrb[2].mxu0 }
 0x129   :  { %v150_v39 = vmax.f32 %v145_v36, 0.0  ;;  %v567_v40 = vpop.f32.mrb[3].mxu0 }
 0x12b   :  { %v151_v41 = vpack.c.bf16 %v150_v39, %v150_v39 }
 0x12d   :  { %293 = vmatmul.mubr.bf16.vlgmr.msra.gmra.mrb[0].mxu1 %v151_v41 }
 0x200   :  { %v294_v53 = vpop.f32.mrb[0].mxu1 }
 0x201   :  { %v295_v54 = vadd.f32 %v294_v53, %v173_v51  ;;  %v296_v55 = vpop.f32.mrb[1].mxu1 }
 0x202   :  { %v297_v56 = vadd.f32 %v296_v55, %v177_v52  ;;  %v298_v57 = vpop.f32.mrb[2].mxu1 }
 0x203   :  { %v301_v58 = vmax.f32 %v295_v54, 0.0  ;;  %v299_v59 = vpop.f32.mrb[3].mxu1 }
 0x204   :  { %v302_v60 = vmax.f32 %v297_v56, 0.0 }
 0x205   :  { %v303_v62 = vpack.c.bf16 %v301_v58, %v301_v58 }
 0x206   :  { %v304_v61 = vpack.c.bf16 %v302_v60, %v302_v60 }
 0x208   :  { %472 = vmatprep.mubr.bf16.mxu0 %v304_v61 }
 0x209   :  { %473 = vmatmul.mubr.bf16.vlgmr.msra.gmra.mrb[4].mxu0 %v303_v62 }
 0x2dc   :  { %v554_v63 = vpop.f32.mrb[4].mxu0 }
 0x2dd   :  { %v555_v1 = vpop.f32.mrb[5].mxu0 }
 0x2de   :  { %v556_v2 = vadd.f32 %v555_v1, %v554_v63  ;;  %v557_v3 = vpop.f32.mrb[6].mxu0 }
 0x2df   :  { %v558_v4 = vpop.f32.mrb[7].mxu0 }
 0x2e0   :  { %v475_v5 = vadd.f32 %v556_v2, %v518_v0 }
 0x2e2   :  { %480 = vst [vmem:[#allocation10] sm:$0xff] %v475_v5 }
 0x2e3   :  { %721 = shalt.err (!%p718_p8)
}
 0x2e4   :  { %s722_s6 = scalar_lea.hbm %s874_s7, 128 }
 0x2e5   :  { %p723_p9 = scmp.ne.s32.totalorder %s874_s7, %s722_s6  ;;  %p726_p10 = scmp.lt.u32.totalorder %s722_s6, %s874_s7 }
 0x2e7   :  { %p728_p11 = pnand %p726_p10, %p723_p9 }
 0x2e9   :  { %731 = shalt.err (!%p728_p11)
}
 0x2ea   :  { %490 = dma.vmem_to_hbm [thread:$0]  %s488_s30, 128, %s874_s7, [#allocation4]  }
 0x2eb   :  { %738 = dma.done.wait [#allocation4], 128  }
 0x2ec   :  { %739 = vsyncadd [#allocation4], 4294967168 }
 0x2ed   :  { %494 = vsyncpa [#allocation3], 1 }
 0x2ee   :  { %495 = vsyncpa [#allocation6], 1 }
 0x2ef   :  { %496 = vsyncpa [#allocation9], 1 }
 0x2f0   :  { %497 = vsyncpa [#allocation4], 1 }

</bundles_post_ra>
